<compile_context>
chip_gen: v6e
topology: v6e:2x2x1
jax: 0.10.0
libtpu: 0.0.40
codegen_flags: <defaults>
</compile_context>

<pallas_src>
import numpy as np
import jax
import jax.numpy as jnp
from jax import lax
from jax.experimental import pallas as pl
from jax.experimental.pallas import tpu as pltpu


# ---------------------------------------------------------------------------
# Pallas kernel: one (batch, row-tile) block of ConvTranspose2d(3,2,1,op1)+PReLU
# ---------------------------------------------------------------------------
def _make_kernel(img_w: int):
    f32 = jnp.float32
    bf16 = jnp.bfloat16

    def kernel(alpha_ref, x_ref, halo_ref, w_ref, b_ref, o_ref):
        # alpha_ref: SMEM (1,)              PReLU slope
        # x_ref    : (1, TP, Cin)           x[i, j]      (TP = tile_rows * img_w)
        # halo_ref : (1, W,  Cin)           first image row of the NEXT tile (clamped at bottom)
        # w_ref    : (4*Cin, 4*Cout) bf16   fused per-quadrant taps (resident)
        # b_ref    : (1, 4*Cout) f32        bias tiled per quadrant (resident)
        # o_ref    : (1, TP, 4*Cout)        quadrants [(0,0)|(0,1)|(1,0)|(1,1)] side by side
        tp = x_ref.shape[1]
        cin = x_ref.shape[2]

        x = x_ref[0].astype(f32)                       # (TP, Cin)   x[i, j]
        halo = halo_ref[0].astype(f32)                 # (W,  Cin)

        # Bottom of the image: the halo row does not exist (index map clamped to a valid
        # block) -> zero its contribution with a scalar multiply.
        not_last = (pl.program_id(1) != pl.num_programs(1) - 1).astype(f32)
        halo = halo * not_last

        # x[i+1, j]: shift the tile down by one image row; halo supplies the last W rows.
        if tp > img_w:
            xd = jnp.concatenate([x[img_w:, :], halo], axis=0)
        else:
            xd = halo

        xpair = jnp.concatenate([x, xd], axis=1)       # (TP, 2*Cin) = [x(i,j) | x(i+1,j)]

        # Right neighbours x[., j+1]: one-pixel flat shift; zero the last image column
        # once on the concatenated pair via a (TP, 1) 0/1 lane-broadcast multiply.
        xpair_r = jnp.concatenate(
            [xpair[1:, :], jnp.zeros((1, 2 * cin), f32)], axis=0)
        col = lax.broadcasted_iota(jnp.int32, (tp, 1), 0) % img_w
        xpair_r = xpair_r * (col < img_w - 1).astype(f32)

        # im2col built directly in bf16 (no (TP, 4*Cin) f32 temp); one fused MXU matmul
        # computes all four parity quadrants with f32 accumulation.
        xcat = jnp.concatenate([xpair.astype(bf16), xpair_r.astype(bf16)], axis=1)
        acc = jnp.dot(xcat, w_ref[...], preferred_element_type=f32)    # (TP, 4*Cout)

        v = acc + b_ref[...]
        a = alpha_ref[0]                                               # PReLU scalar slope
        o_ref[0] = jnp.where(v >= 0.0, v, a * v).astype(o_ref.dtype)

    return kernel


# ---------------------------------------------------------------------------
# Host-side helpers
# ---------------------------------------------------------------------------
def _fuse_weights(w):
    """PyTorch ConvTranspose2d weight (Cin, Cout, 3, 3) -> fused (4*Cin, 4*Cout).

    Row blocks (input source, matching the kernel's xcat lane order):
        [ x[i,j] | x[i+1,j] | x[i,j+1] | x[i+1,j+1] ]
    Column blocks (output parity):
        [ (0,0)  | (0,1)    | (1,0)    | (1,1)      ]
    For stride=2, padding=1, output_padding=1:
        out[2i+py, 2j+px, co] = sum over taps (ky,kx) with iy=(2i+py+1-ky)/2 and
        jx=(2j+px+1-kx)/2 integers of x[iy, jx, ci] * W[ci, co, ky, kx].
    """
    cin, cout = w.shape[0], w.shape[1]
    z = jnp.zeros((cin, cout), w.dtype)
    t = lambda ky, kx: w[:, :, ky, kx]
    rows = [
        jnp.concatenate([t(1, 1), t(1, 2), t(2, 1), t(2, 2)], axis=1),  # x[i, j]
        jnp.concatenate([z,       z,       t(0, 1), t(0, 2)], axis=1),  # x[i+1, j]
        jnp.concatenate([z,       t(1, 0), z,       t(2, 0)], axis=1),  # x[i, j+1]
        jnp.concatenate([z,       z,       z,       t(0, 0)], axis=1),  # x[i+1, j+1]
    ]
    return jnp.concatenate(rows, axis=0)                                # (4*Cin, 4*Cout)


def _vmem_budget():
    """Per-generation VMEM budgeting: (output-tile budget, scoped-VMEM limit)."""
    try:
        cap = int(pltpu.get_tpu_info().vmem_capacity_bytes)
    except Exception:
        cap = 64 * 1024 * 1024                      # conservative: v7x per-TensorCore VMEM
    out_tile_budget = min(4 * 1024 * 1024, cap // 24)    # ~2.7 MiB on v7x, 4 MiB on v5e/v6e
    vmem_limit = min((3 * cap) // 4, 96 * 1024 * 1024)   # past v5e's 16 MiB default scope
    return out_tile_budget, vmem_limit


def _pick_tile_rows(B, H, W, lanes_out, budget_bytes):
    """Largest divisor of H whose f32 output tile fits the budget.  Batch is the first
    parallel axis; rows are only split (to feed both TensorCores) when B == 1.
    # TODO(synk): generalize to non-divisor row tiles (needs edge-row masking in-kernel).
    """
    row_bytes = W * lanes_out * 4
    budget_rows = max(1, budget_bytes // row_bytes)
    divs = [d for d in range(1, H + 1) if H % d == 0 and d <= budget_rows] or [1]
    th = max(divs)
    if B == 1 and th == H:
        smaller = [d for d in divs if d < H]
        if smaller:
            th = max(smaller)
    return th


def deconv_prelu_pallas_nhwc(x_nhwc, params, out_dtype=jnp.float32):
    """Fused ConvTranspose2d(3, s=2, p=1, op=1) + PReLU, NHWC in / NHWC out."""
    B, H, W, Cin = x_nhwc.shape
    Cout = params["w"].shape[1]
    P = H * W
    NQ = 4 * Cout

    if W % 8 != 0:
        # TODO(synk): the halo-row BlockSpec needs W % 8 == 0; other widths need a
        # host-staged halo or element-indexed overlapping windows.
        raise NotImplementedError("deconv_prelu_pallas requires W % 8 == 0")

    out_budget, vmem_limit = _vmem_budget()
    th = _pick_tile_rows(B, H, W, NQ, out_budget)
    tp = th * W
    num_tiles = H // th

    x_flat = x_nhwc.reshape(B, P, Cin)                                  # channels-last, flat spatial

    w_big = _fuse_weights(params["w"]).astype(jnp.bfloat16)             # (4*Cin, 4*Cout)
    b_big = jnp.tile(params["b"], 4).reshape(1, NQ).astype(jnp.float32)
    alpha = jnp.asarray(params["alpha"], jnp.float32).reshape(1)

    kernel = _make_kernel(W)
    flops = 2 * B * P * (4 * Cin) * NQ
    bytes_accessed = (B * P * Cin * 4) + (B * num_tiles * W * Cin * 4) \
        + (4 * Cin * NQ * 2) + (B * P * NQ * jnp.dtype(out_dtype).itemsize)

    # Halo = first image row of the next tile; clamp to the last valid row block at the
    # image bottom (the kernel zeroes the clamped read there).
    halo_map = lambda b, t: (b, jnp.minimum((t + 1) * th, H - 1), 0)

    out_flat = pl.pallas_call(
        kernel,
        out_shape=jax.ShapeDtypeStruct((B, P, NQ), out_dtype),
        grid=(B, num_tiles),
        in_specs=[
            pl.BlockSpec(memory_space=pltpu.MemorySpace.SMEM),           # alpha (1,)
            pl.BlockSpec((1, tp, Cin), lambda b, t: (b, t, 0)),           # main x tile
            pl.BlockSpec((1, W, Cin), halo_map),                          # halo row (same array)
            pl.BlockSpec((4 * Cin, NQ), lambda b, t: (0, 0)),             # fused weights (resident)
            pl.BlockSpec((1, NQ), lambda b, t: (0, 0)),                   # fused bias (resident)
        ],
        out_specs=pl.BlockSpec((1, tp, NQ), lambda b, t: (b, t, 0)),
        compiler_params=pltpu.CompilerParams(
            dimension_semantics=("parallel", "parallel"),
            vmem_limit_bytes=vmem_limit),
        cost_estimate=pl.CostEstimate(
            flops=flops, transcendentals=0, bytes_accessed=int(bytes_accessed)),
    )(alpha, x_flat, x_flat, w_big, b_big)

    # De-interleave the parity quadrants: (B, P, 4*Cout) -> (B, 2H, 2W, Cout).
    # Kept outside the kernel so the kernel's stores stay 128-lane dense; fuse this into
    # the consumer / stay NHWC end-to-end where the surrounding model allows it.
    out = out_flat.reshape(B, H, W, 2, 2, Cout)             # (b, i, j, py, px, c)
    out = out.transpose(0, 1, 3, 2, 4, 5).reshape(B, 2 * H, 2 * W, Cout)
    return out


def deconv_prelu_pallas(x_nchw, params, out_dtype=jnp.float32):
    """NCHW wrapper matching the PyTorch module's layout contract."""
    y = deconv_prelu_pallas_nhwc(jnp.transpose(x_nchw, (0, 2, 3, 1)), params, out_dtype)
    return jnp.transpose(y, (0, 3, 1, 2))


# ---------------------------------------------------------------------------
# Pure-JAX reference (mirrors the PyTorch module exactly)
# ---------------------------------------------------------------------------
def deconv_prelu_reference(x_nchw, params):
    w = params["w"]                                   # (Cin, Cout, 3, 3)
    k, s, p, op = 3, 2, 1, 1
    y = lax.conv_general_dilated(
        x_nchw, jnp.flip(w, (2, 3)),
        window_strides=(1, 1),
        padding=[(k - 1 - p, k - 1 - p + op)] * 2,
        lhs_dilation=(s, s),
        dimension_numbers=("NCHW", "IOHW", "NCHW"),
        precision=lax.Precision.HIGHEST)
    y = y + params["b"][None, :, None, None]
    return jnp.where(y >= 0.0, y, params["alpha"] * y)


def init_params(key, cin, cout, kernel=3):
    kw, kb = jax.random.split(key)
    scale = 1.0 / np.sqrt(cin * kernel * kernel)
    return {
        "w": scale * jax.random.normal(kw, (cin, cout, kernel, kernel), jnp.float32),
        "b": scale * jax.random.normal(kb, (cout,), jnp.float32),
        "alpha": jnp.float32(0.25),                   # nn.PReLU() default init
    }


if __name__ == "__main__":
    B, Cin, Cout, H, W = 2, 32, 32, 16, 16
    key = jax.random.PRNGKey(0)
    kx, kp = jax.random.split(key)
    x = jax.random.normal(kx, (B, Cin, H, W), jnp.float32)
    params = init_params(kp, Cin, Cout)

    fwd = jax.jit(deconv_prelu_pallas)
    out = fwd(x, params)
    jax.block_until_ready(out)

    # (a) tight check vs. the same math with bf16-rounded MXU operands
    #     (isolates indexing/layout bugs from the expected bf16 operand rounding)
    params_b = dict(params)
    params_b["w"] = params["w"].astype(jnp.bfloat16).astype(jnp.float32)
    x_b = x.astype(jnp.bfloat16).astype(jnp.float32)
    ref_b = deconv_prelu_reference(x_b, params_b)
    err_b = float(jnp.max(jnp.abs(out - ref_b)))

    # (b) end-to-end check vs. the exact f32 module semantics
    ref = deconv_prelu_reference(x, params)
    err = float(jnp.max(jnp.abs(out - ref)))

    if not (np.isfinite(err_b) and err_b <= 1e-3):
        raise AssertionError(f"Pallas DeconvPReLu mismatch vs bf16-rounded reference: {err_b}")
    if not (np.isfinite(err) and err <= 5e-2):
        raise AssertionError(f"Pallas DeconvPReLu mismatch vs exact f32 reference: {err}")
    print("KERNEL_OK")
</pallas_src>

<mosaic_0001>
module attributes {stable_mosaic.version = 11 : i64} {
  func.func @kernel(%arg0: i32, %arg1: i32, %arg2: memref<1xf32, #tpu.memory_space<smem>>, %arg3: memref<1x256x32xf32, #tpu.memory_space<vmem>>, %arg4: memref<1x16x32xf32, #tpu.memory_space<vmem>>, %arg5: memref<128x128xbf16, #tpu.memory_space<vmem>>, %arg6: memref<1x128xf32, #tpu.memory_space<vmem>>, %arg7: memref<1x256x128xf32, #tpu.memory_space<vmem>>) attributes {dimension_semantics = [#tpu.dimension_semantics<parallel>, #tpu.dimension_semantics<parallel>], iteration_bounds = array<i64: 2, 1>, scalar_prefetch = 0 : i64, scratch_operands = 0 : i64, tpu.core_type = #tpu.core_type<tc>, window_params = [{transform_indices = @transform_0, window_bounds = array<i64: 1>}, {transform_indices = @transform_1, window_bounds = array<i64: 1, 256, 32>}, {transform_indices = @transform_2, window_bounds = array<i64: 1, 16, 32>}, {pipeline_mode = #tpu.pipeline_mode<synchronous>, transform_indices = @transform_3, window_bounds = array<i64: 128, 128>}, {pipeline_mode = #tpu.pipeline_mode<synchronous>, transform_indices = @transform_4, window_bounds = array<i64: 1, 128>}, {transform_indices = @transform_5, window_bounds = array<i64: 1, 256, 128>}]} {
    %c0 = arith.constant 0 : index
    %c0_0 = arith.constant 0 : index
    %c0_1 = arith.constant 0 : index
    %0 = vector.load %arg3[%c0, %c0_0, %c0_1] : memref<1x256x32xf32, #tpu.memory_space<vmem>>, vector<1x256x32xf32>
    %1 = vector.shape_cast %0 : vector<1x256x32xf32> to vector<256x32xf32>
    %c0_2 = arith.constant 0 : index
    %c0_3 = arith.constant 0 : index
    %c0_4 = arith.constant 0 : index
    %2 = vector.load %arg4[%c0_2, %c0_3, %c0_4] : memref<1x16x32xf32, #tpu.memory_space<vmem>>, vector<1x16x32xf32>
    %3 = vector.shape_cast %2 : vector<1x16x32xf32> to vector<16x32xf32>
    %c0_i32 = arith.constant 0 : i32
    %4 = arith.cmpi ne, %arg1, %c0_i32 : i32
    %5 = arith.extui %4 : i1 to i32
    %6 = arith.sitofp %5 : i32 to f32
    %7 = vector.broadcast %6 : f32 to vector<16x32xf32>
    %8 = arith.mulf %3, %7 : vector<16x32xf32>
    %9 = vector.extract_strided_slice %1 {offsets = [16, 0], sizes = [240, 32], strides = [1, 1]} : vector<256x32xf32> to vector<240x32xf32>
    %10 = tpu.concatenate %9, %8 in 0 : vector<240x32xf32>, vector<16x32xf32> -> vector<256x32xf32>
    %11 = tpu.concatenate %1, %10 in 1 : vector<256x32xf32>, vector<256x32xf32> -> vector<256x64xf32>
    %12 = vector.extract_strided_slice %11 {offsets = [1, 0], sizes = [255, 64], strides = [1, 1]} : vector<256x64xf32> to vector<255x64xf32>
    %cst = arith.constant 0.000000e+00 : f32
    %13 = vector.broadcast %cst : f32 to vector<1x64xf32>
    %14 = tpu.concatenate %12, %13 in 0 : vector<255x64xf32>, vector<1x64xf32> -> vector<256x64xf32>
    %15 = tpu.iota {dimensions = array<i32: 0>} : vector<256x1xi32>
    %c16_i32 = arith.constant 16 : i32
    %c0_i32_5 = arith.constant 0 : i32
    %16 = arith.cmpi eq, %c16_i32, %c0_i32_5 : i32
    %c1_i32 = arith.constant 1 : i32
    %17 = arith.select %16, %c1_i32, %c16_i32 : i32
    %18 = vector.broadcast %17 : i32 to vector<256x1xi32>
    %19 = arith.remsi %15, %18 : vector<256x1xi32>
    %c0_i32_6 = arith.constant 0 : i32
    %20 = vector.broadcast %c0_i32_6 : i32 to vector<256x1xi32>
    %21 = arith.cmpi ne, %19, %20 : vector<256x1xi32>
    %c0_i32_7 = arith.constant 0 : i32
    %22 = vector.broadcast %c0_i32_7 : i32 to vector<256x1xi32>
    %23 = arith.cmpi slt, %19, %22 : vector<256x1xi32>
    %c0_i32_8 = arith.constant 0 : i32
    %24 = arith.cmpi slt, %17, %c0_i32_8 : i32
    %25 = vector.broadcast %24 : i1 to vector<256x1xi1>
    %26 = vector.broadcast %25 : vector<256x1xi1> to vector<256x1xi1>
    %27 = arith.xori %23, %26 : vector<256x1xi1>
    %28 = arith.andi %27, %21 : vector<256x1xi1>
    %29 = vector.broadcast %17 : i32 to vector<256x1xi32>
    %30 = arith.addi %19, %29 : vector<256x1xi32>
    %31 = arith.select %28, %30, %19 : vector<256x1xi1>, vector<256x1xi32>
    %c15_i32 = arith.constant 15 : i32
    %32 = vector.broadcast %c15_i32 : i32 to vector<256x1xi32>
    %33 = arith.cmpi slt, %31, %32 : vector<256x1xi32>
    %34 = arith.extui %33 : vector<256x1xi1> to vector<256x1xi32>
    %35 = arith.sitofp %34 : vector<256x1xi32> to vector<256x1xf32>
    %36 = vector.broadcast %35 : vector<256x1xf32> to vector<256x64xf32>
    %37 = arith.mulf %14, %36 : vector<256x64xf32>
    %38 = arith.truncf %11 : vector<256x64xf32> to vector<256x64xbf16>
    %39 = arith.truncf %37 : vector<256x64xf32> to vector<256x64xbf16>
    %40 = tpu.concatenate %38, %39 in 1 : vector<256x64xbf16>, vector<256x64xbf16> -> vector<256x128xbf16>
    %c0_9 = arith.constant 0 : index
    %c0_10 = arith.constant 0 : index
    %41 = vector.load %arg5[%c0_9, %c0_10] : memref<128x128xbf16, #tpu.memory_space<vmem>>, vector<128x128xbf16>
    %cst_11 = arith.constant dense<0.000000e+00> : vector<256x128xf32>
    %42 = tpu.matmul %40, %41, %cst_11 {dimension_numbers = #tpu.dot_dimension_numbers<[1], [0], [0], [1], [0, 0, 1, 1], [], []>} : vector<256x128xbf16>, vector<128x128xbf16>, vector<256x128xf32> -> vector<256x128xf32>
    %c0_12 = arith.constant 0 : index
    %c0_13 = arith.constant 0 : index
    %43 = vector.load %arg6[%c0_12, %c0_13] : memref<1x128xf32, #tpu.memory_space<vmem>>, vector<1x128xf32>
    %44 = vector.broadcast %43 : vector<1x128xf32> to vector<256x128xf32>
    %45 = arith.addf %42, %44 : vector<256x128xf32>
    %c0_14 = arith.constant 0 : index
    %46 = memref.load %arg2[%c0_14] : memref<1xf32, #tpu.memory_space<smem>>
    %cst_15 = arith.constant 0.000000e+00 : f32
    %47 = vector.broadcast %cst_15 : f32 to vector<256x128xf32>
    %48 = arith.cmpf oge, %45, %47 : vector<256x128xf32>
    %49 = vector.broadcast %46 : f32 to vector<256x128xf32>
    %50 = arith.mulf %49, %45 : vector<256x128xf32>
    %51 = arith.select %48, %45, %50 : vector<256x128xi1>, vector<256x128xf32>
    %c0_16 = arith.constant 0 : index
    %c0_17 = arith.constant 0 : index
    %c0_18 = arith.constant 0 : index
    %52 = vector.load %arg7[%c0_16, %c0_17, %c0_18] : memref<1x256x128xf32, #tpu.memory_space<vmem>>, vector<1x256x128xf32>
    %53 = vector.shape_cast %52 : vector<1x256x128xf32> to vector<256x128xf32>
    %54 = vector.shape_cast %51 : vector<256x128xf32> to vector<1x256x128xf32>
    tpu.vector_store %arg7[%c0_16, %c0_17, %c0_18], %54 {strides = array<i32>} : memref<1x256x128xf32, #tpu.memory_space<vmem>>, vector<1x256x128xf32>,
    return
  }
  func.func @transform_0(%arg0: i32, %arg1: i32) -> i32 {
    %c0_i32 = arith.constant 0 : i32
    %c0_i32_0 = arith.constant 0 : i32
    return %c0_i32 : i32
  }
  func.func @transform_1(%arg0: i32, %arg1: i32) -> (i32, i32, i32) {
    %c0_i32 = arith.constant 0 : i32
    %c0_i32_0 = arith.constant 0 : i32
    return %arg0, %arg1, %c0_i32 : i32, i32, i32
  }
  func.func @transform_2(%arg0: i32, %arg1: i32) -> (i32, i32, i32) {
    %c1_i32 = arith.constant 1 : i32
    %0 = arith.addi %arg1, %c1_i32 : i32
    %c16_i32 = arith.constant 16 : i32
    %1 = arith.muli %0, %c16_i32 : i32
    %c15_i32 = arith.constant 15 : i32
    %2 = arith.minsi %1, %c15_i32 : i32
    %c0_i32 = arith.constant 0 : i32
    %c0_i32_0 = arith.constant 0 : i32
    return %arg0, %2, %c0_i32 : i32, i32, i32
  }
  func.func @transform_3(%arg0: i32, %arg1: i32) -> (i32, i32) {
    %c0_i32 = arith.constant 0 : i32
    %c0_i32_0 = arith.constant 0 : i32
    %c0_i32_1 = arith.constant 0 : i32
    return %c0_i32, %c0_i32_0 : i32, i32
  }
  func.func @transform_4(%arg0: i32, %arg1: i32) -> (i32, i32) {
    %c0_i32 = arith.constant 0 : i32
    %c0_i32_0 = arith.constant 0 : i32
    %c0_i32_1 = arith.constant 0 : i32
    return %c0_i32, %c0_i32_0 : i32, i32
  }
  func.func @transform_5(%arg0: i32, %arg1: i32) -> (i32, i32, i32) {
    %c0_i32 = arith.constant 0 : i32
    %c0_i32_0 = arith.constant 0 : i32
    return %arg0, %arg1, %c0_i32 : i32, i32, i32
  }
}

</mosaic_0001>

<bundles_post_ra>
// kernel: tile.8
= control target key start
LH: loop header
LB: loop body
LE: loop exit
PB: predicated region body
PF: predicated region fallthrough
CT: control target
= control target key end

     0   :  { %s22_s0 = inlined_call_operand.vmem [shape: f32[32], index: 0, kind: input, shape index: {}]   ;;  %s23_s1 = inlined_call_operand.vmem [shape: f32[4,32], index: 1, kind: output, shape index: {}]  }
   0x1   :  { %v4_v0 = vld [vmem:[%s22_s0] ss:$0 sm:$0xff] }
   0x2   :  { %5 = vst [vmem:[%s23_s1] sm:$0xf] %v4_v0 }

// kernel: tile.9
= control target key start
LH: loop header
LB: loop body
LE: loop exit
PB: predicated region body
PF: predicated region fallthrough
CT: control target
= control target key end

     0   :  { %vm8_vm0 = vcmask 261120   ;;  %s40_s8 = smov 32   ;;  %s41_s9 = smov 64   ;;  %vm14_vm1 = vcmask 1048320   ;;  %vm20_vm2 = vcmask 785920   ;;  %vm26_vm3 = vcmask 523520   ;;  %s58_s0 = inlined_call_operand.vmem [shape: f32[4,32], index: 0, kind: input, shape index: {}]   ;;  %s59_s1 = inlined_call_operand.vmem [shape: f32[1,128], index: 1, kind: output, shape index: {}]  }
   0x1   :  { %v5_v0 = vld [vmem:[%s58_s0] sm:$0xf]  ;;  %s39_s0 = smov 96  }
   0x2   :  { %6 = vst [vmem:[#allocation1] sm:$0xf] %v5_v0 }
   0x9   :  { %v11_v1 = vld [vmem:[#allocation1 + $0x3] sm:$0x1]   ;;  %v23_v2 = vld [vmem:[#allocation1 + $0x1] sm:$0x1]   ;;  %v7_v3 = vld [vmem:[#allocation1] sm:$0x1]  }
   0xa   :  { %12 = vrot.lane.b32.xlu0 %v11_v1, %s39_s0  ;;  %24 = vrot.lane.b32.xlu1 %v23_v2, %s40_s8  ;;  %v17_v4 = vld [vmem:[#allocation1 + $0x2] sm:$0x1]   ;;  %9 = vst.msk [vmem:[#allocation0] sm:$0x1] %vm8_vm0, %v7_v3  }
   0xe   :  { %18 = vrot.lane.b32.xlu0 %v17_v4, %s41_s9 }
  0x7c   :  { %v13_v5 = vpop.permute.xlu0 %12   ;;  %v25_v6 = vpop.permute.xlu1 %24  }
  0x7d   :  { %15 = vst.msk [vmem:[#allocation0] sm:$0x1] %vm14_vm1, %v13_v5  }
  0x80   :  { %v19_v7 = vpop.permute.xlu0 %18  }
  0x81   :  { %21 = vst.msk [vmem:[#allocation0] sm:$0x1] %vm20_vm2, %v19_v7  }
  0x82   :  { %27 = vst.msk [vmem:[#allocation0] sm:$0x1] %vm26_vm3, %v25_v6  }
  0x89   :  { %v32_v8 = vld [vmem:[#allocation0] sm:$0x1] }
  0x8a   :  { %35 = vst [vmem:[%s59_s1] sm:$0x1] %v32_v8 }

// kernel: deconv_prelu_pallas.1
= control target key start
LH: loop header
LB: loop body
LE: loop exit
PB: predicated region body
PF: predicated region fallthrough
CT: control target
= control target key end

     0   :  { %s2043_s20 = smov 0   ;;  %s2045_s21 = smov 0   ;;  %s2767_s0 = inlined_call_operand.<no memory space> [shape: f32[1], index: 0, kind: input, shape index: {}]   ;;  %s2768_s1 = inlined_call_operand.vmem [shape: f32[2,256,32], index: 1, kind: input, shape index: {}, may-alias: {1,2}]   ;;  %s2769_s2 = inlined_call_operand.vmem [shape: f32[2,256,32], index: 2, kind: input, shape index: {}, may-alias: {1,2}]   ;;  %s2770_s3 = inlined_call_operand.vmem [shape: bf16[128,128], index: 3, kind: input, shape index: {}]   ;;  %s2771_s4 = inlined_call_operand.vmem [shape: f32[1,128], index: 4, kind: input, shape index: {}]   ;;  %s2772_s5 = inlined_call_operand.vmem [shape: f32[2,256,128], index: 5, kind: output, shape index: {}]  }
   0x1   :  { %10 = sst [smem:[#allocation2]] %s2767_s0  ;;  %s2047_s22 = smov 0  }
   0x2 LB: > { %s28_s0 = sadd.s32 1, %s2001_s21  ;;  %p1821_p0 = scmp.ge.s32.totalorder %s2005_s22, 1  ;;  %s2005_s22 = sphi %s2047_s22, %s16_s22   ;;  %s2001_s21 = sphi %s2045_s21, %s2805_s21   ;;  %s1997_s20 = sphi %s2043_s20, %s2804_s20  }
   0x3   : > { %p30_p1 = scmp.ge.s32.totalorder %s28_s0, 2  ;;  %p242_p2 = scmp.lt.s32.totalorder %s2005_s22, 3 }
   0x5   : > { %s2807_s0 = smov (%p30_p1, %s28_s0), 0  ;;  %p243_p3 = pnand %p1821_p0, %p242_p2 }
   0x6   : > { %p292_p4 = scmp.lt.s32.totalorder (!%p243_p3), %s1997_s20, 1  ;;  %s2007_s27 = smov (!%p243_p3), 32  }
   0x7   : > { %246 = sbr.rel (%p243_p3) target bundleno = 522 (0x20a), region = 40 }
   0xc   : > { %s2809_s20 = smov (!%p292_p4, %s1997_s20), 1  ;;  %v1975_v32 = vld [vmem:[%s2770_s3 + $0x38] sm:$0xff]   ;;  %v1976_v33 = vld [vmem:[%s2770_s3 + $0x30] sm:$0xff]   ;;  %v1977_v36 = vld [vmem:[%s2770_s3 + $0x28] sm:$0xff]   ;;  %v660_v41 = vlaneseq  ;;  %vm498_vm0 = vcmask 261120   ;;  %vm563_vm2 = vcmask 1046528  }
   0xd   : > { %s2061_s23 = sshll.u32 %s2809_s20, 8  ;;  %1884 = vmatprep.subr.bf16.mxu0 %v1975_v32  ;;  %1932 = vmatprep.subr.bf16.mxu1 %v1975_v32  ;;  %v1978_v37 = vld [vmem:[%s2770_s3 + $0x20] sm:$0xff]   ;;  %v1979_v38 = vld [vmem:[%s2770_s3 + $0x18] sm:$0xff]   ;;  %v1980_v39 = vld [vmem:[%s2770_s3 + $0x10] sm:$0xff]  }
   0xe   : > { %s2067_s26 = scalar_lea.vmem %s2768_s1, %s2061_s23  ;;  %s1857_s28 = sadd.s32 240, %s2061_s23  ;;  %1885 = vmatpush3.bf16.msra.mxu0 %v1975_v32  ;;  %1940 = vmatpush3.bf16.msra.mxu1 %v1975_v32  ;;  %v1981_v40 = vld [vmem:[%s2770_s3 + $0x8] sm:$0xff]   ;;  %v2243_v42 = vshrl.u32 %v660_v41, 7 }
   0xf   : > { %v2070_v0 = vld [vmem:[%s2067_s26 + $0x98] sm:$0xff]  ;;  %v2080_v2 = vld [vmem:[%s2067_s26 + $0xa0] sm:$0xff]  ;;  %v2090_v4 = vld [vmem:[%s2067_s26 + $0x30] sm:$0xff]  ;;  %s313_s6 = scalar_lea.vmem %s2769_s2, %s1857_s28  ;;  %1886 = vmatprep.subr.bf16.mxu0 %v1976_v33  ;;  %1933 = vmatprep.subr.bf16.mxu1 %v1976_v33  ;;  %s2662_s7 = scalar_lea.vmem %s2772_s5, %s2061_s23 }
  0x10   : > { %v2073_v1 = vld [vmem:[%s2067_s26 + $0x18] sm:$0xff]  ;;  %436 = vrot.lane.b32.xlu1 %v2070_v0, %s2007_s27  ;;  %v2083_v3 = vld [vmem:[%s2067_s26 + $0x20] sm:$0xff]  ;;  %v2093_v5 = vld [vmem:[%s2067_s26 + $0x28] sm:$0xff]  ;;  %v678_v43 = vadd.s32 136, %v2243_v42  ;;  %v662_v46 = vadd.s32 8, %v2243_v42  ;;  %v680_v48 = vadd.s32 152, %v2243_v42 }
  0x11   : > { %404 = vrot.lane.b32.xlu0 %v2073_v1, %s2007_s27  ;;  %v2100_v6 = vld [vmem:[%s2067_s26 + $0xb0] sm:$0xff]  ;;  %v2103_v7 = vld [vmem:[%s2067_s26 + $0xa8] sm:$0xff]  ;;  %v2120_v10 = vld [vmem:[%s2067_s26 + $0x40] sm:$0xff]  ;;  %v664_v49 = vadd.s32 24, %v2243_v42  ;;  %v666_v56 = vadd.s32 40, %v2243_v42 }
  0x12   : > { %v2106_v8 = vld [vmem:[%s2067_s26 + $0x90] sm:$0xff]  ;;  %v2123_v11 = vld [vmem:[%s2067_s26 + $0x38] sm:$0xff]  ;;  %v2130_v12 = vld [vmem:[%s2067_s26 + $0xc0] sm:$0xff]  ;;  %1887 = vmatpush3.bf16.msra.mxu0 %v1976_v33  ;;  %1941 = vmatpush3.bf16.msra.mxu1 %v1976_v33  ;;  %v816_v47 = vand.u32 15, %v678_v43  ;;  %v704_v52 = vand.u32 15, %v662_v46  ;;  %v830_v54 = vand.u32 15, %v680_v48 }
  0x13   : > { %v2113_v9 = vld [vmem:[%s2067_s26 + $0x10] sm:$0xff]  ;;  %v2133_v13 = vld [vmem:[%s2067_s26 + $0xb8] sm:$0xff]  ;;  %v2143_v15 = vld [vmem:[%s2067_s26 + $0x48] sm:$0xff]  ;;  %1888 = vmatprep.subr.bf16.mxu0 %v1977_v36  ;;  %1934 = vmatprep.subr.bf16.mxu1 %v1977_v36  ;;  %v718_v55 = vand.u32 15, %v664_v49 }
  0x14   : > { %438 = vrot.lane.b32.xlu1 %v2080_v2, %s2007_s27  ;;  %v2140_v14 = vld [vmem:[%s2067_s26 + $0x50] sm:$0xff]  ;;  %v2153_v17 = vld [vmem:[%s2067_s26 + $0xc8] sm:$0xff]  ;;  %v2160_v18 = vld [vmem:[%s2067_s26 + $0x60] sm:$0xff]  ;;  %vm2249_vm1 = vcmp.lt.s32.totalorder %v816_v47, 15  ;;  %vm2282_vm3 = vcmp.lt.s32.totalorder %v704_v52, 15  ;;  %vm2289_vm4 = vcmp.lt.s32.totalorder %v830_v54, 15 }
  0x15   : > { %406 = vrot.lane.b32.xlu0 %v2083_v3, %s2007_s27  ;;  %v2150_v16 = vld [vmem:[%s2067_s26 + $0xd0] sm:$0xff]  ;;  %v2163_v19 = vld [vmem:[%s2067_s26 + $0x58] sm:$0xff]  ;;  %v2170_v20 = vld [vmem:[%s2067_s26 + $0xe0] sm:$0xff]  ;;  %vm2293_vm5 = vcmp.lt.s32.totalorder %v718_v55, 15  ;;  %v668_v52 = vadd.s32 56, %v2243_v42 }
  0x16   : > { %v2173_v21 = vld [vmem:[%s2067_s26 + $0xd8] sm:$0xff]  ;;  %v2180_v22 = vld [vmem:[%s2067_s26 + $0x70] sm:$0xff]  ;;  %v2183_v23 = vld [vmem:[%s2067_s26 + $0x68] sm:$0xff]  ;;  %1889 = vmatpush3.bf16.msra.mxu0 %v1977_v36  ;;  %1942 = vmatpush3.bf16.msra.mxu1 %v1977_v36 }
  0x17   : > { %v2191_v24 = vld [vmem:[%s2067_s26 + $0xf0] sm:$0xff]  ;;  %v2194_v25 = vld [vmem:[%s2067_s26 + $0xe8] sm:$0xff]  ;;  %v2204_v26 = vld [vmem:[%s2067_s26 + $0x80] sm:$0xff]  ;;  %1890 = vmatprep.subr.bf16.mxu0 %v1978_v37  ;;  %1935 = vmatprep.subr.bf16.mxu1 %v1978_v37 }
  0x18   : > { %410 = vrot.lane.b32.xlu1 %v2090_v4, %s2007_s27  ;;  %v2207_v27 = vld [vmem:[%s2067_s26 + $0x78] sm:$0xff]  ;;  %v362_v28 = vld [vmem:[%s313_s6] sm:$0xff]  ;;  %v363_v31 = vld [vmem:[%s313_s6 + $0x8] sm:$0xff] }
  0x19   : > { %408 = vrot.lane.b32.xlu0 %v2093_v5, %s2007_s27  ;;  %v368_v29 = vmul.f32 0.0, %v362_v28  ;;  %v2214_v30 = vld [vmem:[%s2067_s26 + $0xf8] sm:$0xff]  ;;  %v369_v34 = vmul.f32 0.0, %v363_v31  ;;  %v347_v35 = vld [vmem:[%s2067_s26 + $0x88] sm:$0xff]  ;;  %v1982_v28 = vld [vmem:[%s2770_s3] sm:$0xff]   ;;  %v2775_v31 = vmov 0.0  }
  0x1a   : > { %1891 = vmatpush3.bf16.msra.mxu0 %v1978_v37  ;;  %1943 = vmatpush3.bf16.msra.mxu1 %v1978_v37  ;;  %v331_v57 = vld [vmem:[%s2067_s26 + $0x8] sm:$0xff] }
  0x1b   : > { %1892 = vmatprep.subr.bf16.mxu0 %v1979_v38  ;;  %1936 = vmatprep.subr.bf16.mxu1 %v1979_v38 }
  0x1c   : > { %442 = vrot.lane.b32.xlu1 %v2100_v6, %s2007_s27 }
  0x1d   : > { %440 = vrot.lane.b32.xlu0 %v2103_v7, %s2007_s27 }
  0x1e   : > { %1893 = vmatpush3.bf16.msra.mxu0 %v1979_v38  ;;  %1944 = vmatpush3.bf16.msra.mxu1 %v1979_v38 }
  0x1f   : > { %1894 = vmatprep.subr.bf16.mxu0 %v1980_v39  ;;  %1937 = vmatprep.subr.bf16.mxu1 %v1980_v39 }
  0x20   : > { %434 = vrot.lane.b32.xlu1 %v2106_v8, %s2007_s27 }
  0x21   : > { %402 = vrot.lane.b32.xlu0 %v2113_v9, %s2007_s27 }
  0x22   : > { %1895 = vmatpush3.bf16.msra.mxu0 %v1980_v39  ;;  %1945 = vmatpush3.bf16.msra.mxu1 %v1980_v39 }
  0x23   : > { %1896 = vmatprep.subr.bf16.mxu0 %v1981_v40  ;;  %1938 = vmatprep.subr.bf16.mxu1 %v1981_v40 }
  0x24   : > { %414 = vrot.lane.b32.xlu1 %v2120_v10, %s2007_s27 }
  0x25   : > { %412 = vrot.lane.b32.xlu0 %v2123_v11, %s2007_s27 }
  0x26   : > { %1897 = vmatpush3.bf16.msra.mxu0 %v1981_v40  ;;  %1946 = vmatpush3.bf16.msra.mxu1 %v1981_v40  ;;  %v682_v40 = vadd.s32 168, %v2243_v42 }
  0x27   : > { %1898 = vmatprep.subr.bf16.mxu0 %v1982_v28  ;;  %1939 = vmatprep.subr.bf16.mxu1 %v1982_v28 }
  0x28   : > { %446 = vrot.lane.b32.xlu1 %v2130_v12, %s2007_s27 }
  0x29   : > { %444 = vrot.lane.b32.xlu0 %v2133_v13, %s2007_s27 }
  0x2a   : > { %1899 = vmatpush3.bf16.msra.mxu0 %v1982_v28  ;;  %1947 = vmatpush3.bf16.msra.mxu1 %v1982_v28 }
  0x2c   : > { %418 = vrot.lane.b32.xlu1 %v2140_v14, %s2007_s27 }
  0x2d   : > { %416 = vrot.lane.b32.xlu0 %v2143_v15, %s2007_s27 }
  0x30   : > { %450 = vrot.lane.b32.xlu1 %v2150_v16, %s2007_s27 }
  0x31   : > { %448 = vrot.lane.b32.xlu0 %v2153_v17, %s2007_s27 }
  0x34   : > { %422 = vrot.lane.b32.xlu1 %v2160_v18, %s2007_s27 }
  0x35   : > { %420 = vrot.lane.b32.xlu0 %v2163_v19, %s2007_s27 }
  0x38   : > { %454 = vrot.lane.b32.xlu1 %v2170_v20, %s2007_s27 }
  0x39   : > { %452 = vrot.lane.b32.xlu0 %v2173_v21, %s2007_s27 }
  0x3c   : > { %426 = vrot.lane.b32.xlu1 %v2180_v22, %s2007_s27 }
  0x3d   : > { %424 = vrot.lane.b32.xlu0 %v2183_v23, %s2007_s27 }
  0x40   : > { %458 = vrot.lane.b32.xlu1 %v2191_v24, %s2007_s27 }
  0x41   : > { %456 = vrot.lane.b32.xlu0 %v2194_v25, %s2007_s27 }
  0x44   : > { %430 = vrot.lane.b32.xlu1 %v2204_v26, %s2007_s27 }
  0x45   : > { %428 = vrot.lane.b32.xlu0 %v2207_v27, %s2007_s27 }
  0x48   : > { %462 = vrot.lane.b32.xlu1 %v368_v29, %s2007_s27 }
  0x49   : > { %460 = vrot.lane.b32.xlu0 %v2214_v30, %s2007_s27 }
  0x4c   : > { %464 = vrot.lane.b32.xlu1 %v369_v34, %s2007_s27  ;;  %v732_v34 = vand.u32 15, %v666_v56 }
  0x4d   : > { %432 = vrot.lane.b32.xlu0 %v347_v35, %s2007_s27  ;;  %s1582_s27 = sld [smem:[#allocation2]] }
  0x4e   : > { %vm2329_vm6 = vcmp.lt.s32.totalorder %v732_v34, 15 }
  0x82   : > { %v437_v44 = vpop.permute.xlu1 %436 }
  0x83   : > { %v405_v45 = vpop.permute.xlu0 %404  ;;  %v2256_v60 = vsel %vm498_vm0, %v347_v35, %v437_v44 }
  0x84   : > { %v597_v35 = vrot.slane %v2256_v60, 1 }
  0x86   : > { %v439_v50 = vpop.permute.xlu1 %438 }
  0x87   : > { %v407_v51 = vpop.permute.xlu0 %406  ;;  %v2260_v61 = vsel %vm498_vm0, %v2106_v8, %v439_v50  ;;  %v330_v50 = vld [vmem:[%s2067_s26] sm:$0xff]  ;;  %s2009_s26 = smov 64  }
  0x88   : > { %v2264_v62 = vsel %vm498_vm0, %v2113_v9, %v407_v51  ;;  %v1836_v9 = vsel %vm2249_vm1, 1.0, %v2775_v31  ;;  %v599_v36 = vrot.slane %v2260_v61, 1  ;;  %v1828_v51 = vsel %vm2282_vm3, 1.0, %v2775_v31 }
  0x89   : > { %v567_v37 = vrot.slane %v2264_v62, 1 }
  0x8a   : > { %v411_v58 = vpop.permute.xlu1 %410  ;;  %v600_v55 = vsel %vm563_vm2, %v597_v35, %v599_v36 }
  0x8b   : > { %v409_v59 = vpop.permute.xlu0 %408  ;;  %v2275_v29 = vsel %vm498_vm0, %v2083_v3, %v411_v58  ;;  %v844_v58 = vand.u32 15, %v682_v40 }
  0x8c   : > { %v2268_v63 = vsel %vm498_vm0, %v2073_v1, %v409_v59  ;;  %v2287_v1 = vsel %vm498_vm0, %v331_v57, %v405_v45  ;;  %v2774_v41 = vrot.slane %v2275_v29, 1 }
  0x8d   : > { %v569_v43 = vrot.slane %v2268_v63, 1  ;;  %v565_v46 = vrot.slane %v2287_v1, 1  ;;  %vm2375_vm7 = vcmp.lt.s32.totalorder %v844_v58, 15 }
  0x8e   : > { %v443_v38 = vpop.permute.xlu1 %442 }
  0x8f   : > { %v441_v39 = vpop.permute.xlu0 %440  ;;  %v2305_v44 = vsel %vm498_vm0, %v2080_v2, %v443_v38  ;;  %v1837_v2 = vsel %vm2289_vm4, 1.0, %v2775_v31  ;;  %v568_v56 = vsel %vm563_vm2, %v565_v46, %v567_v37  ;;  %v572_v33 = vsel %vm563_vm2, %v569_v43, %v2774_v41 }
  0x90   : > { %v2309_v45 = vsel %vm498_vm0, %v2070_v0, %v441_v39  ;;  %v2773_v47 = vrot.slane %v2305_v44, 1  ;;  %v1829_v0 = vsel %vm2293_vm5, 1.0, %v2775_v31  ;;  %v1190_v39 = vmul.f32 %v1836_v9, %v600_v55 }
  0x91   : > { %v601_v48 = vrot.slane %v2309_v45, 1  ;;  %v1174_v40 = vmul.f32 %v1828_v51, %v568_v56  ;;  %v1176_v34 = vmul.f32 %v1829_v0, %v572_v33 }
  0x92   : > { %v435_v53 = vpop.permute.xlu1 %434 }
  0x93   : > { %v403_v54 = vpop.permute.xlu0 %402  ;;  %v2335_v59 = vsel %vm498_vm0, %v2204_v26, %v435_v53  ;;  %v604_v32 = vsel %vm563_vm2, %v601_v48, %v2773_v47  ;;  %v684_v53 = vadd.s32 184, %v2243_v42  ;;  %v602_v57 = vsel %vm563_vm2, %v599_v36, %v601_v48 }
  0x94   : > { %v2338_v28 = vsel %vm498_vm0, %v330_v50, %v403_v54  ;;  %v595_v3 = vrot.slane %v2335_v59, 1  ;;  %v746_v50 = vand.u32 15, %v668_v52  ;;  %v1192_v41 = vmul.f32 %v1837_v2, %v604_v32 }
  0x95   : > { %v564_v38 = vrot.slane %v2338_v28, 1  ;;  %v1205_v26 = vpack.c.bf16 %v2287_v1, %v2338_v28 }
  0x96   : > { %v415_v54 = vpop.permute.xlu1 %414  ;;  %v598_v8 = vsel %vm563_vm2, %v595_v3, %v597_v35  ;;  %vm2379_vm8 = vcmp.lt.s32.totalorder %v746_v50, 15  ;;  %v1230_v58 = vpack.c.bf16 %v1192_v41, %v602_v57  ;;  %v2795_v57 = vrot.slane %v2305_v44, 1 }
  0x97   : > { %v413_v49 = vpop.permute.xlu0 %412  ;;  %v566_v47 = vsel %vm563_vm2, %v564_v38, %v565_v46  ;;  %v2359_v31 = vsel %vm498_vm0, %v2090_v4, %v415_v54  ;;  %v1229_v51 = vpack.c.bf16 %v1190_v39, %v598_v8  ;;  %v2787_v46 = vmov 0.0  }
  0x98   : > { %v2363_v9 = vsel %vm498_vm0, %v2093_v5, %v413_v49  ;;  %v1221_v52 = vpack.c.bf16 %v1174_v40, %v566_v47  ;;  %v575_v55 = vrot.slane %v2359_v31, 1  ;;  %v1830_v2 = vsel %vm2329_vm6, 1.0, %v2787_v46 }
  0x99   : > { %v573_v56 = vrot.slane %v2363_v9, 1  ;;  %v1207_v35 = vpack.c.bf16 %v2363_v9, %v2275_v29  ;;  %1269 = vrot.lane.b32.xlu1 %v1229_v51, %s2009_s26  ;;  %v570_v4 = vsel %vm563_vm2, %v567_v37, %v569_v43  ;;  %v858_v47 = vand.u32 15, %v684_v53 }
  0x9a   : > { %1253 = vrot.lane.b32.xlu0 %v1221_v52, %s2009_s26  ;;  %v447_v49 = vpop.permute.xlu1 %446  ;;  %v1222_v32 = vpack.c.bf16 %v1176_v34, %v570_v4  ;;  %v670_v38 = vadd.s32 72, %v2243_v42  ;;  %v1838_v48 = vsel %vm2375_vm7, 1.0, %v2787_v46  ;;  %v2794_v53 = vrot.slane %v2275_v29, 1 }
  0x9b   : > { %v445_v0 = vpop.permute.xlu0 %444  ;;  %v576_v33 = vsel %vm563_vm2, %v573_v56, %v575_v55  ;;  %v2388_v37 = vsel %vm498_vm0, %v2100_v6, %v447_v49  ;;  %v1831_v6 = vsel %vm2379_vm8, 1.0, %v2787_v46  ;;  %vm2406_vm9 = vcmp.lt.s32.totalorder %v858_v47, 15 }
  0x9c   : > { %v2392_v43 = vsel %vm498_vm0, %v2103_v7, %v445_v0  ;;  %v1178_v39 = vmul.f32 %v1830_v2, %v576_v33  ;;  %v607_v40 = vrot.slane %v2388_v37, 1  ;;  %v574_v54 = vsel %vm563_vm2, %v2794_v53, %v573_v56 }
  0x9d   : > { %v605_v50 = vrot.slane %v2392_v43, 1  ;;  %v1215_v36 = vpack.c.bf16 %v2392_v43, %v2305_v44  ;;  %1271 = vrot.lane.b32.xlu1 %v1230_v58, %s2009_s26  ;;  %v760_v52 = vand.u32 15, %v670_v38  ;;  %v686_v2 = vadd.s32 200, %v2243_v42 }
  0x9e   : > { %1255 = vrot.lane.b32.xlu0 %v1222_v32, %s2009_s26  ;;  %v419_v41 = vpop.permute.xlu1 %418  ;;  %v1223_v8 = vpack.c.bf16 %v1178_v39, %v574_v54  ;;  %v1839_v58 = vsel %vm2406_vm9, 1.0, %v2787_v46 }
  0x9f   : > { %v417_v34 = vpop.permute.xlu0 %416  ;;  %v608_v51 = vsel %vm563_vm2, %v605_v50, %v607_v40  ;;  %v2417_v4 = vsel %vm498_vm0, %v2120_v10, %v419_v41  ;;  %v606_v32 = vsel %vm563_vm2, %v2795_v57, %v605_v50  ;;  %vm1086_vm10 = vcmp.lt.s32.totalorder %v760_v52, 15 }
  0xa0   : > { %v2421_v5 = vsel %vm498_vm0, %v2123_v11, %v417_v34  ;;  %v1194_v47 = vmul.f32 %v1838_v48, %v608_v51  ;;  %v579_v49 = vrot.slane %v2417_v4, 1  ;;  %v872_v39 = vand.u32 15, %v686_v2 }
  0xa1   : > { %v577_v0 = vrot.slane %v2421_v5, 1  ;;  %v1208_v56 = vpack.c.bf16 %v2421_v5, %v2359_v31  ;;  %v672_v34 = vadd.s32 88, %v2243_v42 }
  0xa2   : > { %1257 = vrot.lane.b32.xlu0 %v1223_v8, %s2009_s26  ;;  %v1231_v10 = vpack.c.bf16 %v1194_v47, %v606_v32  ;;  %v451_v33 = vpop.permute.xlu1 %450  ;;  %v1832_v8 = vsel %vm1086_vm10, 1.0, %v2787_v46  ;;  %vm1102_vm11 = vcmp.lt.s32.totalorder %v872_v39, 15 }
  0xa3   : > { %v449_v38 = vpop.permute.xlu0 %448  ;;  %v580_v11 = vsel %vm563_vm2, %v577_v0, %v579_v49  ;;  %v2437_v48 = vsel %vm498_vm0, %v2130_v12, %v451_v33  ;;  %v578_v51 = vsel %vm563_vm2, %v575_v55, %v577_v0  ;;  %v774_v0 = vand.u32 15, %v672_v34 }
  0xa4   : > { %v2441_v50 = vsel %vm498_vm0, %v2133_v13, %v449_v38  ;;  %1273 = vrot.lane.b32.xlu1 %v1231_v10, %s2009_s26  ;;  %v1180_v41 = vmul.f32 %v1831_v6, %v580_v11  ;;  %v611_v53 = vrot.slane %v2437_v48, 1  ;;  %v688_v6 = vadd.s32 216, %v2243_v42 }
  0xa5   : > { %v609_v7 = vrot.slane %v2441_v50, 1  ;;  %v1216_v54 = vpack.c.bf16 %v2441_v50, %v2388_v37  ;;  %vm2479_vm12 = vcmp.lt.s32.totalorder %v774_v0, 15  ;;  %v690_v0 = vadd.s32 232, %v2243_v42 }
  0xa6   : > { %v1224_v12 = vpack.c.bf16 %v1180_v41, %v578_v51  ;;  %v423_v52 = vpop.permute.xlu1 %422  ;;  %v886_v51 = vand.u32 15, %v688_v6 }
  0xa7   : > { %v421_v2 = vpop.permute.xlu0 %420  ;;  %v612_v13 = vsel %vm563_vm2, %v609_v7, %v611_v53  ;;  %v2455_v47 = vsel %vm498_vm0, %v2140_v14, %v423_v52  ;;  %v610_v38 = vsel %vm563_vm2, %v607_v40, %v609_v7 }
  0xa8   : > { %v2459_v57 = vsel %vm498_vm0, %v2143_v15, %v421_v2  ;;  %1259 = vrot.lane.b32.xlu0 %v1224_v12, %s2009_s26  ;;  %v1196_v55 = vmul.f32 %v1839_v58, %v612_v13  ;;  %v583_v32 = vrot.slane %v2455_v47, 1  ;;  %v1840_v15 = vsel %vm1102_vm11, 1.0, %v2787_v46 }
  0xa9   : > { %v581_v10 = vrot.slane %v2459_v57, 1  ;;  %v1209_v33 = vpack.c.bf16 %v2459_v57, %v2417_v4  ;;  %v674_v58 = vadd.s32 104, %v2243_v42  ;;  %vm1104_vm13 = vcmp.lt.s32.totalorder %v886_v51, 15 }
  0xaa   : > { %v1232_v11 = vpack.c.bf16 %v1196_v55, %v610_v38  ;;  %v455_v14 = vpop.permute.xlu1 %454 }
  0xab   : > { %v453_v39 = vpop.permute.xlu0 %452  ;;  %v584_v41 = vsel %vm563_vm2, %v581_v10, %v583_v32  ;;  %v2472_v34 = vsel %vm498_vm0, %v2150_v16, %v455_v14  ;;  %v582_v16 = vsel %vm563_vm2, %v579_v49, %v581_v10  ;;  %v1833_v10 = vsel %vm2479_vm12, 1.0, %v2787_v46 }
  0xac   : > { %v2476_v12 = vsel %vm498_vm0, %v2153_v17, %v453_v39  ;;  %1275 = vrot.lane.b32.xlu1 %v1232_v11, %s2009_s26  ;;  %v1182_v40 = vmul.f32 %v1832_v8, %v584_v41  ;;  %v615_v52 = vrot.slane %v2472_v34, 1  ;;  %v788_v8 = vand.u32 15, %v674_v58 }
  0xad   : > { %v613_v2 = vrot.slane %v2476_v12, 1  ;;  %v1217_v13 = vpack.c.bf16 %v2476_v12, %v2437_v48 }
  0xae   : > { %v1225_v6 = vpack.c.bf16 %v1182_v40, %v582_v16  ;;  %v427_v55 = vpop.permute.xlu1 %426  ;;  %vm2510_vm14 = vcmp.lt.s32.totalorder %v788_v8, 15 }
  0xaf   : > { %v425_v17 = vpop.permute.xlu0 %424  ;;  %v616_v38 = vsel %vm563_vm2, %v613_v2, %v615_v52  ;;  %v2492_v11 = vsel %vm498_vm0, %v2160_v18, %v427_v55  ;;  %v614_v18 = vsel %vm563_vm2, %v611_v53, %v613_v2  ;;  %v900_v55 = vand.u32 15, %v690_v0 }
  0xb0   : > { %v2496_v14 = vsel %vm498_vm0, %v2163_v19, %v425_v17  ;;  %1261 = vrot.lane.b32.xlu0 %v1225_v6, %s2009_s26  ;;  %v1198_v49 = vmul.f32 %v1840_v15, %v616_v38  ;;  %v587_v39 = vrot.slane %v2492_v11, 1  ;;  %v1841_v19 = vsel %vm1104_vm13, 1.0, %v2787_v46 }
  0xb1   : > { %v585_v41 = vrot.slane %v2496_v14, 1  ;;  %v692_v6 = vadd.s32 248, %v2243_v42  ;;  %v676_v38 = vadd.s32 120, %v2243_v42  ;;  %vm1106_vm15 = vcmp.lt.s32.totalorder %v900_v55, 15 }
  0xb2   : > { %v1233_v58 = vpack.c.bf16 %v1198_v49, %v614_v18  ;;  %v459_v40 = vpop.permute.xlu1 %458  ;;  %v2803_v37 = vpack.c.bf16 %v2496_v14, %v2455_v47 }
  0xb3   : > { %v457_v16 = vpop.permute.xlu0 %456  ;;  %v588_v15 = vsel %vm563_vm2, %v585_v41, %v587_v39  ;;  %v2516_v17 = vsel %vm498_vm0, %v2170_v20, %v459_v40  ;;  %v586_v18 = vsel %vm563_vm2, %v583_v32, %v585_v41  ;;  %v802_v41 = vand.u32 15, %v676_v38 }
  0xb4   : > { %v2520_v53 = vsel %vm498_vm0, %v2173_v21, %v457_v16  ;;  %1277 = vrot.lane.b32.xlu1 %v1233_v58, %s2009_s26  ;;  %v1184_v2 = vmul.f32 %v1833_v10, %v588_v15  ;;  %v619_v49 = vrot.slane %v2516_v17, 1  ;;  %v914_v16 = vand.u32 15, %v692_v6 }
  0xb5   : > { %v617_v8 = vrot.slane %v2520_v53, 1  ;;  %v1218_v0 = vpack.c.bf16 %v2520_v53, %v2472_v34  ;;  %v1834_v10 = vsel %vm2510_vm14, 1.0, %v2787_v46  ;;  %vm1092_vm3 = vcmp.lt.s32.totalorder %v802_v41, 15  ;;  %v2652_v34 = vld [vmem:[%s2771_s4] ss:$0 sm:$0xff] }
  0xb6   : > { %v1226_v20 = vpack.c.bf16 %v1184_v2, %v586_v18  ;;  %v431_v40 = vpop.permute.xlu1 %430  ;;  %vm1108_vm1 = vcmp.lt.s32.totalorder %v914_v16, 15 }
  0xb7   : > { %v429_v51 = vpop.permute.xlu0 %428  ;;  %v620_v21 = vsel %vm563_vm2, %v617_v8, %v619_v49  ;;  %v2535_v42 = vsel %vm498_vm0, %v2180_v22, %v431_v40  ;;  %v618_v55 = vsel %vm563_vm2, %v615_v52, %v617_v8 }
  0xb8   : > { %v2539_v58 = vsel %vm498_vm0, %v2183_v23, %v429_v51  ;;  %1263 = vrot.lane.b32.xlu0 %v1226_v20, %s2009_s26  ;;  %v1200_v32 = vmul.f32 %v1841_v19, %v620_v21  ;;  %v591_v15 = vrot.slane %v2535_v42, 1  ;;  %v1842_v51 = vsel %vm1106_vm15, 1.0, %v2787_v46 }
  0xb9   : > { %v589_v6 = vrot.slane %v2539_v58, 1  ;;  %v1211_v7 = vpack.c.bf16 %v2539_v58, %v2492_v11 }
  0xba   : > { %v1234_v2 = vpack.c.bf16 %v1200_v32, %v618_v55  ;;  %v463_v22 = vpop.permute.xlu1 %462 }
  0xbb   : > { %v461_v18 = vpop.permute.xlu0 %460  ;;  %v592_v23 = vsel %vm563_vm2, %v589_v6, %v591_v15  ;;  %v2551_v19 = vsel %vm498_vm0, %v2191_v24, %v463_v22  ;;  %v590_v21 = vsel %vm563_vm2, %v587_v39, %v589_v6  ;;  %v1843_v24 = vsel %vm1108_vm1, 1.0, %v2787_v46 }
  0xbc   : > { %v2555_v38 = vsel %vm498_vm0, %v2194_v25, %v461_v18  ;;  %1279 = vrot.lane.b32.xlu1 %v1234_v2, %s2009_s26  ;;  %v1186_v20 = vmul.f32 %v1834_v10, %v592_v23  ;;  %v623_v52 = vrot.slane %v2551_v19, 1  ;;  %v1835_v2 = vsel %vm1092_vm3, 1.0, %v2787_v46 }
  0xbd   : > { %v621_v8 = vrot.slane %v2555_v38, 1  ;;  %v1219_v40 = vpack.c.bf16 %v2555_v38, %v2516_v17 }
  0xbe   : > { %v1227_v16 = vpack.c.bf16 %v1186_v20, %v590_v21  ;;  %v465_v32 = vpop.permute.xlu1 %464 }
  0xbf   : > { %v433_v55 = vpop.permute.xlu0 %432  ;;  %v624_v25 = vsel %vm563_vm2, %v621_v8, %v623_v52  ;;  %v2568_v10 = vsel %vm498_vm0, %v2214_v30, %v465_v32  ;;  %v622_v39 = vsel %vm563_vm2, %v619_v49, %v621_v8 }
  0xc0   : > { %v2572_v41 = vsel %vm498_vm0, %v2207_v27, %v433_v55  ;;  %1265 = vrot.lane.b32.xlu0 %v1227_v16, %s2009_s26  ;;  %v1202_v6 = vmul.f32 %v1842_v51, %v624_v25  ;;  %v625_v22 = vrot.slane %v2568_v10, 1  ;;  %v1220_v18 = vpack.c.bf16 %v2568_v10, %v2551_v19 }
  0xc1   : > { %v593_v46 = vrot.slane %v2572_v41, 1  ;;  %v1212_v30 = vpack.c.bf16 %v2572_v41, %v2535_v42  ;;  %vm1285_vm0 = vcmask 523264   ;;  %v2801_v25 = vpack.c.bf16 %v2268_v63, %v2264_v62 }
  0xc2   : > { %v1235_v23 = vpack.c.bf16 %v1202_v6, %v622_v39  ;;  %v659_v20 = vsel %vm563_vm2, %v625_v22, 0.0  ;;  %v626_v51 = vsel %vm563_vm2, %v623_v52, %v625_v22  ;;  %v2802_v10 = vpack.c.bf16 %v2309_v45, %v2260_v61 }
  0xc3   : > { %v596_v27 = vsel %vm563_vm2, %v593_v46, %v595_v3  ;;  %v1204_v21 = vmul.f32 %v1843_v24, %v659_v20  ;;  %v594_v19 = vsel %vm563_vm2, %v591_v15, %v593_v46  ;;  %v2800_v24 = vpack.c.bf16 %v2256_v60, %v2335_v59 }
  0xc4   : > { %1281 = vrot.lane.b32.xlu1 %v1235_v23, %s2009_s26  ;;  %v1188_v49 = vmul.f32 %v1835_v2, %v596_v27 }
  0xc5   : > { %v1236_v8 = vpack.c.bf16 %v1204_v21, %v626_v51 }
  0xc6   : > { %v1228_v16 = vpack.c.bf16 %v1188_v49, %v594_v19 }
  0xc8   : > { %1283 = vrot.lane.b32.xlu1 %v1236_v8, %s2009_s26  ;;  %1267 = vrot.lane.b32.xlu0 %v1228_v16, %s2009_s26 }
 0x10b   : > { %v1270_v42 = vpop.permute.xlu1 %1269 }
 0x10c   : > { %v1254_v32 = vpop.permute.xlu0 %1253  ;;  %v1320_v52 = vsel %vm1285_vm0, %v2800_v24, %v1270_v42 }
 0x10d   : > { %v1288_v3 = vsel %vm1285_vm0, %v1205_v26, %v1254_v32  ;;  %1916 = vmatprep.mubr.bf16.mxu1 %v1320_v52 }
 0x10e   : > { %1900 = vmatprep.mubr.bf16.mxu0 %v1288_v3 }
 0x10f   : > { %v1272_v15 = vpop.permute.xlu1 %1271 }
 0x110   : > { %v1256_v55 = vpop.permute.xlu0 %1255  ;;  %v1324_v1 = vsel %vm1285_vm0, %v2802_v10, %v1272_v15 }
 0x111   : > { %v1292_v2 = vsel %vm1285_vm0, %v2801_v25, %v1256_v55  ;;  %1917 = vmatmul.mubr.bf16.vlgmr.msra.gmra.mxu1 %v1324_v1 }
 0x112   : > { %1901 = vmatmul.mubr.bf16.vlgmr.msra.gmra.mxu0 %v1292_v2 }
 0x114   : > { %v1258_v28 = vpop.permute.xlu0 %1257 }
 0x115   : > { %v1296_v60 = vsel %vm1285_vm0, %v1207_v35, %v1258_v28 }
 0x116   : > { %v1274_v59 = vpop.permute.xlu1 %1273  ;;  %1904 = vmatprep.mubr.bf16.mxu0 %v1296_v60 }
 0x117   : > { %v1328_v62 = vsel %vm1285_vm0, %v1215_v36, %v1274_v59 }
 0x118   : > { %1920 = vmatprep.mubr.bf16.mxu1 %v1328_v62 }
 0x11a   : > { %v1260_v63 = vpop.permute.xlu0 %1259 }
 0x11b   : > { %v1300_v61 = vsel %vm1285_vm0, %v1208_v56, %v1260_v63 }
 0x11c   : > { %1905 = vmatmul.mubr.bf16.gmra.mxu0 %v1300_v61 }
 0x11e   : > { %v1276_v45 = vpop.permute.xlu1 %1275 }
 0x11f   : > { %v1332_v29 = vsel %vm1285_vm0, %v1216_v54, %v1276_v45 }
 0x120   : > { %1921 = vmatmul.mubr.bf16.gmra.mxu1 %v1332_v29 }
 0x122   : > { %v1262_v26 = vpop.permute.xlu0 %1261 }
 0x123   : > { %v1304_v44 = vsel %vm1285_vm0, %v1209_v33, %v1262_v26 }
 0x124   : > { %1908 = vmatprep.mubr.bf16.mxu0 %v1304_v44 }
 0x126   : > { %v1278_v9 = vpop.permute.xlu1 %1277 }
 0x127   : > { %v1336_v31 = vsel %vm1285_vm0, %v1217_v13, %v1278_v9  ;;  %v2654_v13 = vstv %s1582_s27 }
 0x128   : > { %1924 = vmatprep.mubr.bf16.mxu1 %v1336_v31 }
 0x12a   : > { %v1264_v35 = vpop.permute.xlu0 %1263 }
 0x12b   : > { %v1308_v43 = vsel %vm1285_vm0, %v2803_v37, %v1264_v35 }
 0x12c   : > { %1909 = vmatmul.mubr.bf16.gmra.mxu0 %v1308_v43 }
 0x12e   : > { %v1280_v36 = vpop.permute.xlu1 %1279 }
 0x12f   : > { %v1340_v4 = vsel %vm1285_vm0, %v1218_v0, %v1280_v36 }
 0x130   : > { %1925 = vmatmul.mubr.bf16.gmra.mxu1 %v1340_v4 }
 0x132   : > { %v1266_v5 = vpop.permute.xlu0 %1265 }
 0x133   : > { %v1312_v56 = vsel %vm1285_vm0, %v1211_v7, %v1266_v5 }
 0x134   : > { %1912 = vmatprep.mubr.bf16.mxu0 %v1312_v56 }
 0x136   : > { %v1282_v48 = vpop.permute.xlu1 %1281 }
 0x137   : > { %v1344_v50 = vsel %vm1285_vm0, %v1219_v40, %v1282_v48 }
 0x138   : > { %1928 = vmatprep.mubr.bf16.mxu1 %v1344_v50 }
 0x13a   : > { %v1284_v54 = vpop.permute.xlu1 %1283  ;;  %v1268_v47 = vpop.permute.xlu0 %1267 }
 0x13b   : > { %v1316_v57 = vsel %vm1285_vm0, %v1212_v30, %v1268_v47  ;;  %v1348_v33 = vsel %vm1285_vm0, %v1220_v18, %v1284_v54 }
 0x13c   : > { %1913 = vmatmul.mubr.bf16.gmra.mxu0 %v1316_v57  ;;  %1929 = vmatmul.mubr.bf16.gmra.mxu1 %v1348_v33 }
 0x1d1   : > { %v1918_v11 = vpop.f32.mrf.mxu1 }
 0x1d2   : > { %v1902_v12 = vpop.f32.mrf.mxu0  ;;  %v1528_v17 = vadd.f32 %v1918_v11, %v2652_v34 }
 0x1d3   : > { %v1464_v14 = vadd.f32 %v1902_v12, %v2652_v34  ;;  %v1519_v0 = vpop.f32.mrf.mxu1 }
 0x1d4   : > { %v1455_v53 = vpop.f32.mrf.mxu0  ;;  %vm1601_vm4 = vcmp.ge.f32.partialorder %v1528_v17, 0.0  ;;  %v1634_v7 = vmul.f32 %v2654_v13, %v1528_v17  ;;  %v1520_v40 = vadd.f32 %v2652_v34, %v1519_v0 }
 0x1d5   : > { %vm1585_vm2 = vcmp.ge.f32.partialorder %v1464_v14, 0.0  ;;  %v1618_v58 = vmul.f32 %v2654_v13, %v1464_v14  ;;  %v1456_v38 = vadd.f32 %v2652_v34, %v1455_v53  ;;  %v1919_v39 = vpop.f32.mrf.mxu1 }
 0x1d6   : > { %v1903_v41 = vpop.f32.mrf.mxu0  ;;  %v1666_v22 = vsel %vm1601_vm4, %v1528_v17, %v1634_v7  ;;  %v1531_v46 = vadd.f32 %v1919_v39, %v2652_v34  ;;  %vm1599_vm6 = vcmp.ge.f32.partialorder %v1520_v40, 0.0  ;;  %v1632_v23 = vmul.f32 %v2654_v13, %v1520_v40 }
 0x1d7   : > { %v1650_v6 = vsel %vm1585_vm2, %v1464_v14, %v1618_v58  ;;  %v1467_v18 = vadd.f32 %v1903_v41, %v2652_v34  ;;  %1698 = vst [vmem:[%s2662_s7 + $0x90] sm:$0xff] %v1666_v22  ;;  %vm1583_vm5 = vcmp.ge.f32.partialorder %v1456_v38, 0.0  ;;  %v1616_v30 = vmul.f32 %v2654_v13, %v1456_v38  ;;  %v1522_v27 = vpop.f32.mrf.mxu1 }
 0x1d8   : > { %1682 = vst [vmem:[%s2662_s7 + $0x10] sm:$0xff] %v1650_v6  ;;  %v1458_v20 = vpop.f32.mrf.mxu0  ;;  %vm1602_vm8 = vcmp.ge.f32.partialorder %v1531_v46, 0.0  ;;  %v1635_v49 = vmul.f32 %v2654_v13, %v1531_v46  ;;  %v1664_v19 = vsel %vm1599_vm6, %v1520_v40, %v1632_v23  ;;  %v1523_v16 = vadd.f32 %v2652_v34, %v1522_v27 }
 0x1d9   : > { %vm1586_vm7 = vcmp.ge.f32.partialorder %v1467_v18, 0.0  ;;  %v1619_v21 = vmul.f32 %v2654_v13, %v1467_v18  ;;  %v1648_v51 = vsel %vm1583_vm5, %v1456_v38, %v1616_v30  ;;  %v1459_v8 = vadd.f32 %v2652_v34, %v1458_v20  ;;  %1696 = vst [vmem:[%s2662_s7 + $0x80] sm:$0xff] %v1664_v19 }
 0x1da   : > { %1680 = vst [vmem:[%s2662_s7] sm:$0xff] %v1648_v51  ;;  %v1667_v32 = vsel %vm1602_vm8, %v1531_v46, %v1635_v49  ;;  %vm1600_vm10 = vcmp.ge.f32.partialorder %v1523_v16, 0.0  ;;  %v1633_v24 = vmul.f32 %v2654_v13, %v1523_v16 }
 0x1db   : > { %v1651_v42 = vsel %vm1586_vm7, %v1467_v18, %v1619_v21  ;;  %1699 = vst [vmem:[%s2662_s7 + $0x98] sm:$0xff] %v1667_v32  ;;  %vm1584_vm9 = vcmp.ge.f32.partialorder %v1459_v8, 0.0  ;;  %v1617_v3 = vmul.f32 %v2654_v13, %v1459_v8 }
 0x1dc   : > { %1683 = vst [vmem:[%s2662_s7 + $0x18] sm:$0xff] %v1651_v42  ;;  %v1906_v52 = vpop.f32.mrf.mxu0  ;;  %v1665_v25 = vsel %vm1600_vm10, %v1523_v16, %v1633_v24 }
 0x1dd   : > { %v1480_v15 = vadd.f32 %v1906_v52, %v2652_v34  ;;  %v1649_v55 = vsel %vm1584_vm9, %v1459_v8, %v1617_v3  ;;  %1697 = vst [vmem:[%s2662_s7 + $0x88] sm:$0xff] %v1665_v25 }
 0x1de   : > { %v1471_v2 = vpop.f32.mrf.mxu0  ;;  %1681 = vst [vmem:[%s2662_s7 + $0x8] sm:$0xff] %v1649_v55 }
 0x1df   : > { %vm1589_vm11 = vcmp.ge.f32.partialorder %v1480_v15, 0.0  ;;  %v1622_v10 = vmul.f32 %v2654_v13, %v1480_v15  ;;  %v1472_v1 = vadd.f32 %v2652_v34, %v1471_v2 }
 0x1e0   : > { %v1907_v28 = vpop.f32.mrf.mxu0  ;;  %v1922_v60 = vpop.f32.mrf.mxu1 }
 0x1e1   : > { %v1654_v59 = vsel %vm1589_vm11, %v1480_v15, %v1622_v10  ;;  %vm1587_vm12 = vcmp.ge.f32.partialorder %v1472_v1, 0.0  ;;  %v1620_v62 = vmul.f32 %v2654_v13, %v1472_v1  ;;  %v1483_v63 = vadd.f32 %v1907_v28, %v2652_v34 }
 0x1e2   : > { %1686 = vst [vmem:[%s2662_s7 + $0x30] sm:$0xff] %v1654_v59  ;;  %v1544_v61 = vadd.f32 %v1922_v60, %v2652_v34  ;;  %v1474_v45 = vpop.f32.mrf.mxu0  ;;  %v1535_v29 = vpop.f32.mrf.mxu1 }
 0x1e3   : > { %v1652_v26 = vsel %vm1587_vm12, %v1472_v1, %v1620_v62  ;;  %vm1590_vm13 = vcmp.ge.f32.partialorder %v1483_v63, 0.0  ;;  %v1623_v44 = vmul.f32 %v2654_v13, %v1483_v63  ;;  %v1475_v9 = vadd.f32 %v2652_v34, %v1474_v45 }
 0x1e4   : > { %1684 = vst [vmem:[%s2662_s7 + $0x20] sm:$0xff] %v1652_v26  ;;  %vm1605_vm14 = vcmp.ge.f32.partialorder %v1544_v61, 0.0  ;;  %v1638_v31 = vmul.f32 %v2654_v13, %v1544_v61  ;;  %v1536_v35 = vadd.f32 %v2652_v34, %v1535_v29  ;;  %v1923_v37 = vpop.f32.mrf.mxu1 }
 0x1e5   : > { %v1655_v43 = vsel %vm1590_vm13, %v1483_v63, %v1623_v44  ;;  %vm1588_vm15 = vcmp.ge.f32.partialorder %v1475_v9, 0.0  ;;  %v1621_v36 = vmul.f32 %v2654_v13, %v1475_v9  ;;  %v1547_v4 = vadd.f32 %v1923_v37, %v2652_v34 }
 0x1e6   : > { %1687 = vst [vmem:[%s2662_s7 + $0x38] sm:$0xff] %v1655_v43  ;;  %v1670_v5 = vsel %vm1605_vm14, %v1544_v61, %v1638_v31  ;;  %vm1603_vm1 = vcmp.ge.f32.partialorder %v1536_v35, 0.0  ;;  %v1636_v56 = vmul.f32 %v2654_v13, %v1536_v35  ;;  %v1538_v48 = vpop.f32.mrf.mxu1 }
 0x1e7   : > { %1702 = vst [vmem:[%s2662_s7 + $0xb0] sm:$0xff] %v1670_v5  ;;  %v1653_v50 = vsel %vm1588_vm15, %v1475_v9, %v1621_v36  ;;  %vm1606_vm3 = vcmp.ge.f32.partialorder %v1547_v4, 0.0  ;;  %v1639_v54 = vmul.f32 %v2654_v13, %v1547_v4  ;;  %v1539_v47 = vadd.f32 %v2652_v34, %v1538_v48 }
 0x1e8   : > { %1685 = vst [vmem:[%s2662_s7 + $0x28] sm:$0xff] %v1653_v50  ;;  %v1668_v57 = vsel %vm1603_vm1, %v1536_v35, %v1636_v56 }
 0x1e9   : > { %1700 = vst [vmem:[%s2662_s7 + $0xa0] sm:$0xff] %v1668_v57  ;;  %v1671_v33 = vsel %vm1606_vm3, %v1547_v4, %v1639_v54  ;;  %vm1604_vm0 = vcmp.ge.f32.partialorder %v1539_v47, 0.0  ;;  %v1637_v12 = vmul.f32 %v2654_v13, %v1539_v47 }
 0x1ea   : > { %1703 = vst [vmem:[%s2662_s7 + $0xb8] sm:$0xff] %v1671_v33 }
 0x1eb   : > { %v1669_v11 = vsel %vm1604_vm0, %v1539_v47, %v1637_v12 }
 0x1ec   : > { %1701 = vst [vmem:[%s2662_s7 + $0xa8] sm:$0xff] %v1669_v11  ;;  %v1910_v14 = vpop.f32.mrf.mxu0 }
 0x1ed   : > { %v1496_v17 = vadd.f32 %v1910_v14, %v2652_v34 }
 0x1ee   : > { %v1487_v53 = vpop.f32.mrf.mxu0 }
 0x1ef   : > { %vm1593_vm2 = vcmp.ge.f32.partialorder %v1496_v17, 0.0  ;;  %v1626_v0 = vmul.f32 %v2654_v13, %v1496_v17  ;;  %v1488_v58 = vadd.f32 %v2652_v34, %v1487_v53 }
 0x1f0   : > { %v1911_v7 = vpop.f32.mrf.mxu0  ;;  %v1926_v38 = vpop.f32.mrf.mxu1 }
 0x1f1   : > { %v1658_v40 = vsel %vm1593_vm2, %v1496_v17, %v1626_v0  ;;  %vm1591_vm4 = vcmp.ge.f32.partialorder %v1488_v58, 0.0  ;;  %v1624_v41 = vmul.f32 %v2654_v13, %v1488_v58  ;;  %v1499_v39 = vadd.f32 %v1911_v7, %v2652_v34 }
 0x1f2   : > { %1690 = vst [vmem:[%s2662_s7 + $0x50] sm:$0xff] %v1658_v40  ;;  %v1560_v6 = vadd.f32 %v1926_v38, %v2652_v34  ;;  %v1490_v22 = vpop.f32.mrf.mxu0  ;;  %v1551_v18 = vpop.f32.mrf.mxu1 }
 0x1f3   : > { %v1656_v46 = vsel %vm1591_vm4, %v1488_v58, %v1624_v41  ;;  %vm1594_vm5 = vcmp.ge.f32.partialorder %v1499_v39, 0.0  ;;  %v1627_v30 = vmul.f32 %v2654_v13, %v1499_v39  ;;  %v1491_v23 = vadd.f32 %v2652_v34, %v1490_v22 }
 0x1f4   : > { %1688 = vst [vmem:[%s2662_s7 + $0x40] sm:$0xff] %v1656_v46  ;;  %vm1609_vm6 = vcmp.ge.f32.partialorder %v1560_v6, 0.0  ;;  %v1642_v20 = vmul.f32 %v2654_v13, %v1560_v6  ;;  %v1552_v27 = vadd.f32 %v2652_v34, %v1551_v18  ;;  %v1927_v21 = vpop.f32.mrf.mxu1 }
 0x1f5   : > { %v1659_v49 = vsel %vm1594_vm5, %v1499_v39, %v1627_v30  ;;  %vm1592_vm7 = vcmp.ge.f32.partialorder %v1491_v23, 0.0  ;;  %v1625_v51 = vmul.f32 %v2654_v13, %v1491_v23  ;;  %v1563_v19 = vadd.f32 %v1927_v21, %v2652_v34 }
 0x1f6   : > { %1691 = vst [vmem:[%s2662_s7 + $0x58] sm:$0xff] %v1659_v49  ;;  %v1674_v8 = vsel %vm1609_vm6, %v1560_v6, %v1642_v20  ;;  %vm1607_vm8 = vcmp.ge.f32.partialorder %v1552_v27, 0.0  ;;  %v1640_v16 = vmul.f32 %v2654_v13, %v1552_v27  ;;  %v1554_v42 = vpop.f32.mrf.mxu1 }
 0x1f7   : > { %1706 = vst [vmem:[%s2662_s7 + $0xd0] sm:$0xff] %v1674_v8  ;;  %v1657_v32 = vsel %vm1592_vm7, %v1491_v23, %v1625_v51  ;;  %vm1610_vm9 = vcmp.ge.f32.partialorder %v1563_v19, 0.0  ;;  %v1643_v3 = vmul.f32 %v2654_v13, %v1563_v19  ;;  %v1555_v24 = vadd.f32 %v2652_v34, %v1554_v42 }
 0x1f8   : > { %1689 = vst [vmem:[%s2662_s7 + $0x48] sm:$0xff] %v1657_v32  ;;  %v1672_v52 = vsel %vm1607_vm8, %v1552_v27, %v1640_v16 }
 0x1f9   : > { %1704 = vst [vmem:[%s2662_s7 + $0xc0] sm:$0xff] %v1672_v52  ;;  %v1675_v15 = vsel %vm1610_vm9, %v1563_v19, %v1643_v3  ;;  %vm1608_vm10 = vcmp.ge.f32.partialorder %v1555_v24, 0.0  ;;  %v1641_v55 = vmul.f32 %v2654_v13, %v1555_v24 }
 0x1fa   : > { %1707 = vst [vmem:[%s2662_s7 + $0xd8] sm:$0xff] %v1675_v15 }
 0x1fb   : > { %v1673_v25 = vsel %vm1608_vm10, %v1555_v24, %v1641_v55 }
 0x1fc   : > { %1705 = vst [vmem:[%s2662_s7 + $0xc8] sm:$0xff] %v1673_v25  ;;  %v1914_v2 = vpop.f32.mrf.mxu0  ;;  %v1930_v10 = vpop.f32.mrf.mxu1 }
 0x1fd   : > { %v1512_v1 = vadd.f32 %v1914_v2, %v2652_v34  ;;  %v1576_v28 = vadd.f32 %v1930_v10, %v2652_v34 }
 0x1fe   : > { %v1503_v60 = vpop.f32.mrf.mxu0  ;;  %v1567_v59 = vpop.f32.mrf.mxu1 }
 0x1ff   : > { %vm1597_vm11 = vcmp.ge.f32.partialorder %v1512_v1, 0.0  ;;  %v1630_v62 = vmul.f32 %v2654_v13, %v1512_v1  ;;  %vm1613_vm12 = vcmp.ge.f32.partialorder %v1576_v28, 0.0  ;;  %v1646_v63 = vmul.f32 %v2654_v13, %v1576_v28 }
 0x200   : > { %v1504_v61 = vadd.f32 %v2652_v34, %v1503_v60  ;;  %v1568_v45 = vadd.f32 %v2652_v34, %v1567_v59  ;;  %v1915_v29 = vpop.f32.mrf.mxu0  ;;  %v1931_v26 = vpop.f32.mrf.mxu1 }
 0x201   : > { %v1662_v44 = vsel %vm1597_vm11, %v1512_v1, %v1630_v62  ;;  %v1678_v9 = vsel %vm1613_vm12, %v1576_v28, %v1646_v63  ;;  %v1515_v31 = vadd.f32 %v1915_v29, %v2652_v34  ;;  %v1579_v35 = vadd.f32 %v1931_v26, %v2652_v34 }
 0x202   : > { %1694 = vst [vmem:[%s2662_s7 + $0x70] sm:$0xff] %v1662_v44  ;;  %1710 = vst [vmem:[%s2662_s7 + $0xf0] sm:$0xff] %v1678_v9  ;;  %vm1595_vm13 = vcmp.ge.f32.partialorder %v1504_v61, 0.0  ;;  %v1628_v37 = vmul.f32 %v2654_v13, %v1504_v61  ;;  %vm1611_vm14 = vcmp.ge.f32.partialorder %v1568_v45, 0.0  ;;  %v1644_v43 = vmul.f32 %v2654_v13, %v1568_v45  ;;  %v1506_v36 = vpop.f32.mrf.mxu0  ;;  %v1570_v4 = vpop.f32.mrf.mxu1 }
 0x203   : > { %vm1598_vm15 = vcmp.ge.f32.partialorder %v1515_v31, 0.0  ;;  %v1631_v5 = vmul.f32 %v2654_v13, %v1515_v31  ;;  %vm1614_vm1 = vcmp.ge.f32.partialorder %v1579_v35, 0.0  ;;  %v1647_v56 = vmul.f32 %v2654_v13, %v1579_v35 }
 0x204   : > { %v1660_v48 = vsel %vm1595_vm13, %v1504_v61, %v1628_v37  ;;  %v1676_v50 = vsel %vm1611_vm14, %v1568_v45, %v1644_v43  ;;  %v1507_v54 = vadd.f32 %v2652_v34, %v1506_v36  ;;  %v1571_v47 = vadd.f32 %v2652_v34, %v1570_v4 }
 0x205   : > { %1692 = vst [vmem:[%s2662_s7 + $0x60] sm:$0xff] %v1660_v48  ;;  %1708 = vst [vmem:[%s2662_s7 + $0xe0] sm:$0xff] %v1676_v50  ;;  %v1663_v57 = vsel %vm1598_vm15, %v1515_v31, %v1631_v5  ;;  %v1679_v33 = vsel %vm1614_vm1, %v1579_v35, %v1647_v56 }
 0x206   : > { %1695 = vst [vmem:[%s2662_s7 + $0x78] sm:$0xff] %v1663_v57  ;;  %1711 = vst [vmem:[%s2662_s7 + $0xf8] sm:$0xff] %v1679_v33  ;;  %vm1596_vm3 = vcmp.ge.f32.partialorder %v1507_v54, 0.0  ;;  %v1629_v12 = vmul.f32 %v2654_v13, %v1507_v54  ;;  %vm1612_vm0 = vcmp.ge.f32.partialorder %v1571_v47, 0.0  ;;  %v1645_v11 = vmul.f32 %v2654_v13, %v1571_v47 }
 0x208   : > { %v1661_v14 = vsel %vm1596_vm3, %v1507_v54, %v1629_v12  ;;  %v1677_v17 = vsel %vm1612_vm0, %v1571_v47, %v1645_v11 }
 0x209   : > { %1693 = vst [vmem:[%s2662_s7 + $0x68] sm:$0xff] %v1661_v14  ;;  %1709 = vst [vmem:[%s2662_s7 + $0xe8] sm:$0xff] %v1677_v17 }
 0x20a PF: > { %s16_s22 = sadd.s32 1, %s2005_s22   ;;  %s2804_s20 = smov %s2001_s21 }
 0x20b   : > { %p13_p5 = scmp.ge.s32.totalorder %s16_s22, 4   ;;  %s2805_s21 = smov %s2807_s0 }
 0x20d   :  { %15 = sbr.rel (!%p13_p5) target bundleno = 2 (0x2), region = 73 }

</bundles_post_ra>
